<compile_context>
chip_gen: v7x
topology: tpu7x:2x2x1
jax: 0.10.0
libtpu: 0.0.40
codegen_flags: <defaults>
</compile_context>

<pallas_src>
import math
from functools import partial

import jax
import jax.numpy as jnp
from jax.experimental import pallas as pl
from jax.experimental.pallas import tpu as pltpu


def _round_up(x, m):
    return ((x + m - 1) // m) * m


def _photonic_core_kernel(uv_ref, pq_ref, out_ref, acc_ref, *,
                          one_plus_ta_sq, coupling_loss, base, newton):
    """One (batch-tile, out-tile, k-tile) grid step.

    uv_ref : (2, TB, TK)  [cos(u); sin(u)],  u = phi_base + phase_scale * x
    pq_ref : (2, TO, TK)  [2ta*cos(phi0); 2ta*sin(phi0)]
    out_ref: (TB, TO)     written on the last k step only
    acc_ref: (TB, TO, AW) lane-partial accumulator of sum_j 1/den
    """
    k = pl.program_id(2)
    n_rows, tile_o, acc_w = acc_ref.shape
    tile_k = pq_ref.shape[-1]
    n_chunks = tile_k // acc_w

    @pl.when(k == 0)
    def _():
        acc_ref[...] = jnp.zeros_like(acc_ref)

    cp2 = pq_ref[0]          # (TO, TK)  2*t*a*cos(phi0)
    sp2 = pq_ref[1]          # (TO, TK)  2*t*a*sin(phi0)
    cu_all = uv_ref[0]       # (TB, TK)  cos(u)
    su_all = uv_ref[1]       # (TB, TK)  sin(u)

    # Static unroll over the (few) batch rows: every temporary is a 2-D
    # (TO, TK) slab, never a 3-D array.
    for r in range(n_rows):
        cu = cu_all[r:r + 1, :]                    # (1, TK) sublane broadcast
        su = su_all[r:r + 1, :]
        # den = 1 + (ta)^2 - 2ta*cos(phi);  cos(phi) = cu*cp - su*sp and the
        # 2ta factor is pre-folded into cp2/sp2 (FMA-friendly form).
        den = (one_plus_ta_sq + su * sp2) - cu * cp2          # (TO, TK) > 0
        inv = pl.reciprocal(den, approx=True)                 # EUP slot
        if newton:
            inv = inv * (2.0 - den * inv)                     # 1 Newton step
        # Fold TK -> ACC_W with lane-aligned VALU adds; the 128->1 XLU reduce
        # is deferred to the finalize block.
        part = inv[:, :acc_w]
        for c in range(1, n_chunks):
            part = part + inv[:, c * acc_w:(c + 1) * acc_w]
        acc_ref[r] += part

    @pl.when(k == pl.num_programs(2) - 1)
    def _():
        # Single cross-lane reduce + relayout, then the affine finalize:
        # sum_j T = n_in - C * sum_j 1/den   (padded-k correction in `base`).
        total = jnp.sum(acc_ref[...], axis=-1)                # (TB, TO)
        out_ref[...] = base - coupling_loss * total


def photonic_core_forward(x, phi0, *, coupling_coeff, resonator_radius,
                          refractive_index, wavelength=1.55e-6,
                          round_trip_amplitude=0.99, voltage_phase_scale=0.05,
                          newton_refine=True):
    """x: (B, input_size) f32, phi0: (output_size, input_size) f32
       -> (B, output_size) f32."""
    x = jnp.asarray(x, jnp.float32)
    phi0 = jnp.asarray(phi0, jnp.float32)
    B, n_in = x.shape
    n_out, n_in2 = phi0.shape
    assert n_in == n_in2

    t = math.sqrt(1.0 - coupling_coeff * coupling_coeff)
    a = round_trip_amplitude
    ta = t * a
    coupling_loss = (1.0 - t * t) * (1.0 - a * a)      # == den - num
    one_plus_ta_sq = 1.0 + ta * ta
    circumference = 2.0 * math.pi * resonator_radius
    phi_base = math.fmod(
        2.0 * math.pi * refractive_index * circumference / wavelength,
        2.0 * math.pi)

    # ---- Hoisted transcendentals (reused across the whole grid) -----------
    # 2*(B + n_out)*n_in cos/sin ops total instead of B*n_out*n_in in-kernel.
    # 2*t*a is folded into the phi0 tables (reused B times per element).
    u = phi_base + voltage_phase_scale * x             # (B, n_in)
    cu, su = jnp.cos(u), jnp.sin(u)
    cp2 = (2.0 * ta) * jnp.cos(phi0)                   # (n_out, n_in)
    sp2 = (2.0 * ta) * jnp.sin(phi0)
    # TODO(synk): when phi0 is a static weight, cp2/sp2 (and their packed
    # padded form) should be computed once and cached across calls.

    # ---- Adaptive tiles ----------------------------------------------------
    # Full-extent blocks are exempt from the (8,128) rule, so small dims stay
    # unpadded (no wasted VALU work).  Only large axes are tiled/padded.
    if n_in <= 256:
        tile_k, Kp = n_in, n_in
    else:
        tile_k = 256
        Kp = _round_up(n_in, tile_k)
    if n_out <= 256:
        tile_o, Op = n_out, n_out                      # one masked vst, fine
    else:
        tile_o = 256                                   # lane-dense output
        Op = _round_up(n_out, tile_o)
    if B <= 8:
        tile_b, Bp = B, B
    else:
        tile_b = 8                                     # >=2 parallel b-steps
        Bp = _round_up(B, tile_b)
    acc_w = 128 if tile_k % 128 == 0 else tile_k       # lane-partial width

    # ---- Pack (cos,sin) pairs -> 2 input DMA streams instead of 4 ----------
    # Zero-padded k columns (cu = su = 0) give den = 1+(ta)^2 exactly; that
    # constant is corrected via `base`.  Padded B/O rows are sliced off.
    if (Bp, Kp) == (B, n_in):
        uv = jnp.stack([cu, su])                       # (2, B, n_in), no pad
    else:
        uv = jnp.zeros((2, Bp, Kp), jnp.float32)
        uv = uv.at[0, :B, :n_in].set(cu).at[1, :B, :n_in].set(su)
    if (Op, Kp) == (n_out, n_in):
        pq = jnp.stack([cp2, sp2])                     # (2, n_out, n_in)
    else:
        pq = jnp.zeros((2, Op, Kp), jnp.float32)
        pq = pq.at[0, :n_out, :n_in].set(cp2).at[1, :n_out, :n_in].set(sp2)

    n_pad_k = Kp - n_in
    base = float(n_in) + coupling_loss * n_pad_k / one_plus_ta_sq

    grid = (Bp // tile_b, Op // tile_o, Kp // tile_k)

    kernel = partial(_photonic_core_kernel,
                     one_plus_ta_sq=one_plus_ta_sq,
                     coupling_loss=coupling_loss,
                     base=base,
                     newton=newton_refine)

    out_padded = pl.pallas_call(
        kernel,
        out_shape=jax.ShapeDtypeStruct((Bp, Op), jnp.float32),
        grid=grid,
        in_specs=[
            pl.BlockSpec((2, tile_b, tile_k), lambda b, o, k: (0, b, k)),  # uv
            pl.BlockSpec((2, tile_o, tile_k), lambda b, o, k: (0, o, k)),  # pq
        ],
        out_specs=pl.BlockSpec((tile_b, tile_o), lambda b, o, k: (b, o)),
        scratch_shapes=[pltpu.VMEM((tile_b, tile_o, acc_w), jnp.float32)],
        compiler_params=pltpu.CompilerParams(
            dimension_semantics=("parallel", "parallel", "arbitrary")),
    )(uv, pq)

    if (Bp, Op) == (B, n_out):
        return out_padded
    return out_padded[:B, :n_out]


def reference_forward(x, phi0, *, coupling_coeff, resonator_radius,
                      refractive_index, wavelength=1.55e-6,
                      round_trip_amplitude=0.99, voltage_phase_scale=0.05):
    """Pure-JAX reference mirroring the PyTorch double-loop semantics."""
    t = math.sqrt(1.0 - coupling_coeff * coupling_coeff)
    a = round_trip_amplitude
    circumference = 2.0 * math.pi * resonator_radius
    phi_base = math.fmod(
        2.0 * math.pi * refractive_index * circumference / wavelength,
        2.0 * math.pi)
    phi = phi_base + voltage_phase_scale * x[:, None, :] + phi0[None, :, :]
    c = jnp.cos(phi)
    ta = t * a
    T = ((t * t + a * a) - 2.0 * ta * c) / ((1.0 + ta * ta) - 2.0 * ta * c)
    return jnp.sum(T, axis=-1)


if __name__ == "__main__":
    # Module hyperparameters (deterministic, in-script).
    input_size = 16
    output_size = 16
    batch = 2
    resonator_radius = 5.0e-6      # 5 um ring
    coupling_coeff = 0.3
    refractive_index = 2.4

    key = jax.random.PRNGKey(0)
    k_x, k_phi = jax.random.split(key)
    # "Voltages" applied to each resonator column.
    x = jax.random.normal(k_x, (batch, input_size), dtype=jnp.float32)
    # Deterministic per-resonator detuning (stands in for per-MicroRingResonator
    # parameters of the nn.ModuleList).
    phi0 = jax.random.uniform(k_phi, (output_size, input_size),
                              dtype=jnp.float32, minval=0.0,
                              maxval=2.0 * math.pi)

    out = photonic_core_forward(
        x, phi0,
        coupling_coeff=coupling_coeff,
        resonator_radius=resonator_radius,
        refractive_index=refractive_index)
    out = jax.block_until_ready(out)

    ref = reference_forward(
        x, phi0,
        coupling_coeff=coupling_coeff,
        resonator_radius=resonator_radius,
        refractive_index=refractive_index)

    assert out.shape == (batch, output_size)
    # The angle-addition decomposition is algebraically exact but rounds
    # differently in f32; near resonance den ~ (1-ta)^2 ~ 3e-3 amplifies
    # ulp-level cos differences to ~1e-4 in T, so compare at 2e-3.
    assert jnp.allclose(out, ref, atol=2e-3, rtol=2e-3), (out, ref)
    print("KERNEL_OK")
</pallas_src>

<mosaic_0001>
module attributes {stable_mosaic.version = 11 : i64} {
  func.func @_photonic_core_kernel(%arg0: i32, %arg1: i32, %arg2: i32, %arg3: memref<2x2x16xf32, #tpu.memory_space<vmem>>, %arg4: memref<2x16x16xf32, #tpu.memory_space<vmem>>, %arg5: memref<2x16xf32, #tpu.memory_space<vmem>>, %arg6: memref<2x16x16xf32, #tpu.memory_space<vmem>>) attributes {dimension_semantics = [#tpu.dimension_semantics<parallel>, #tpu.dimension_semantics<parallel>, #tpu.dimension_semantics<arbitrary>], iteration_bounds = array<i64: 1, 1, 1>, scalar_prefetch = 0 : i64, scratch_operands = 1 : i64, tpu.core_type = #tpu.core_type<tc>, window_params = [{transform_indices = @transform_0, window_bounds = array<i64: 2, 2, 16>}, {transform_indices = @transform_1, window_bounds = array<i64: 2, 16, 16>}, {transform_indices = @transform_2, window_bounds = array<i64: 2, 16>}]} {
    %c0_i32 = arith.constant 0 : i32
    %0 = arith.cmpi eq, %arg2, %c0_i32 : i32
    %1 = arith.extui %0 : i1 to i32
    %c0_i32_0 = arith.constant 0 : i32
    %2 = arith.cmpi ne, %1, %c0_i32_0 : i32
    scf.if %2 {
      %cst_28 = arith.constant 0.000000e+00 : f32
      %54 = vector.broadcast %cst_28 : f32 to vector<2x16x16xf32>
      %c0_29 = arith.constant 0 : index
      %c0_30 = arith.constant 0 : index
      %c0_31 = arith.constant 0 : index
      %55 = vector.load %arg6[%c0_29, %c0_30, %c0_31] : memref<2x16x16xf32, #tpu.memory_space<vmem>>, vector<2x16x16xf32>
      tpu.vector_store %arg6[%c0_29, %c0_30, %c0_31], %54 {strides = array<i32>} : memref<2x16x16xf32, #tpu.memory_space<vmem>>, vector<2x16x16xf32>,
    } else {
    }
    %c0 = arith.constant 0 : index
    %c0_1 = arith.constant 0 : index
    %c0_2 = arith.constant 0 : index
    %3 = vector.load %arg4[%c0, %c0_1, %c0_2] : memref<2x16x16xf32, #tpu.memory_space<vmem>>, vector<1x16x16xf32>
    %4 = vector.shape_cast %3 : vector<1x16x16xf32> to vector<16x16xf32>
    %c1 = arith.constant 1 : index
    %c0_3 = arith.constant 0 : index
    %c0_4 = arith.constant 0 : index
    %5 = vector.load %arg4[%c1, %c0_3, %c0_4] : memref<2x16x16xf32, #tpu.memory_space<vmem>>, vector<1x16x16xf32>
    %6 = vector.shape_cast %5 : vector<1x16x16xf32> to vector<16x16xf32>
    %c0_5 = arith.constant 0 : index
    %c0_6 = arith.constant 0 : index
    %c0_7 = arith.constant 0 : index
    %7 = vector.load %arg3[%c0_5, %c0_6, %c0_7] : memref<2x2x16xf32, #tpu.memory_space<vmem>>, vector<1x2x16xf32>
    %8 = vector.shape_cast %7 : vector<1x2x16xf32> to vector<2x16xf32>
    %c1_8 = arith.constant 1 : index
    %c0_9 = arith.constant 0 : index
    %c0_10 = arith.constant 0 : index
    %9 = vector.load %arg3[%c1_8, %c0_9, %c0_10] : memref<2x2x16xf32, #tpu.memory_space<vmem>>, vector<1x2x16xf32>
    %10 = vector.shape_cast %9 : vector<1x2x16xf32> to vector<2x16xf32>
    %11 = vector.extract_strided_slice %8 {offsets = [0, 0], sizes = [1, 16], strides = [1, 1]} : vector<2x16xf32> to vector<1x16xf32>
    %12 = vector.extract_strided_slice %10 {offsets = [0, 0], sizes = [1, 16], strides = [1, 1]} : vector<2x16xf32> to vector<1x16xf32>
    %13 = vector.broadcast %12 : vector<1x16xf32> to vector<16x16xf32>
    %14 = arith.mulf %13, %6 : vector<16x16xf32>
    %cst = arith.constant 1.891891 : f32
    %15 = vector.broadcast %cst : f32 to vector<16x16xf32>
    %16 = arith.addf %15, %14 : vector<16x16xf32>
    %17 = vector.broadcast %11 : vector<1x16xf32> to vector<16x16xf32>
    %18 = arith.mulf %17, %4 : vector<16x16xf32>
    %19 = arith.subf %16, %18 : vector<16x16xf32>
    %20 = tpu.reciprocal %19 {approx = true} : vector<16x16xf32> -> vector<16x16xf32>
    %21 = arith.mulf %19, %20 : vector<16x16xf32>
    %cst_11 = arith.constant 2.000000e+00 : f32
    %22 = vector.broadcast %cst_11 : f32 to vector<16x16xf32>
    %23 = arith.subf %22, %21 : vector<16x16xf32>
    %24 = arith.mulf %20, %23 : vector<16x16xf32>
    %c0_12 = arith.constant 0 : index
    %c0_13 = arith.constant 0 : index
    %c0_14 = arith.constant 0 : index
    %25 = vector.load %arg6[%c0_12, %c0_13, %c0_14] : memref<2x16x16xf32, #tpu.memory_space<vmem>>, vector<1x16x16xf32>
    %26 = vector.shape_cast %25 : vector<1x16x16xf32> to vector<16x16xf32>
    %27 = arith.addf %26, %24 : vector<16x16xf32>
    %c0_15 = arith.constant 0 : index
    %c0_16 = arith.constant 0 : index
    %c0_17 = arith.constant 0 : index
    %28 = vector.load %arg6[%c0_15, %c0_16, %c0_17] : memref<2x16x16xf32, #tpu.memory_space<vmem>>, vector<1x16x16xf32>
    %29 = vector.shape_cast %28 : vector<1x16x16xf32> to vector<16x16xf32>
    %30 = vector.shape_cast %27 : vector<16x16xf32> to vector<1x16x16xf32>
    tpu.vector_store %arg6[%c0_15, %c0_16, %c0_17], %30 {strides = array<i32>} : memref<2x16x16xf32, #tpu.memory_space<vmem>>, vector<1x16x16xf32>,
    %31 = vector.extract_strided_slice %8 {offsets = [1, 0], sizes = [1, 16], strides = [1, 1]} : vector<2x16xf32> to vector<1x16xf32>
    %32 = vector.extract_strided_slice %10 {offsets = [1, 0], sizes = [1, 16], strides = [1, 1]} : vector<2x16xf32> to vector<1x16xf32>
    %33 = vector.broadcast %32 : vector<1x16xf32> to vector<16x16xf32>
    %34 = arith.mulf %33, %6 : vector<16x16xf32>
    %cst_18 = arith.constant 1.891891 : f32
    %35 = vector.broadcast %cst_18 : f32 to vector<16x16xf32>
    %36 = arith.addf %35, %34 : vector<16x16xf32>
    %37 = vector.broadcast %31 : vector<1x16xf32> to vector<16x16xf32>
    %38 = arith.mulf %37, %4 : vector<16x16xf32>
    %39 = arith.subf %36, %38 : vector<16x16xf32>
    %40 = tpu.reciprocal %39 {approx = true} : vector<16x16xf32> -> vector<16x16xf32>
    %41 = arith.mulf %39, %40 : vector<16x16xf32>
    %cst_19 = arith.constant 2.000000e+00 : f32
    %42 = vector.broadcast %cst_19 : f32 to vector<16x16xf32>
    %43 = arith.subf %42, %41 : vector<16x16xf32>
    %44 = arith.mulf %40, %43 : vector<16x16xf32>
    %c1_20 = arith.constant 1 : index
    %c0_21 = arith.constant 0 : index
    %c0_22 = arith.constant 0 : index
    %45 = vector.load %arg6[%c1_20, %c0_21, %c0_22] : memref<2x16x16xf32, #tpu.memory_space<vmem>>, vector<1x16x16xf32>
    %46 = vector.shape_cast %45 : vector<1x16x16xf32> to vector<16x16xf32>
    %47 = arith.addf %46, %44 : vector<16x16xf32>
    %c1_23 = arith.constant 1 : index
    %c0_24 = arith.constant 0 : index
    %c0_25 = arith.constant 0 : index
    %48 = vector.load %arg6[%c1_23, %c0_24, %c0_25] : memref<2x16x16xf32, #tpu.memory_space<vmem>>, vector<1x16x16xf32>
    %49 = vector.shape_cast %48 : vector<1x16x16xf32> to vector<16x16xf32>
    %50 = vector.shape_cast %47 : vector<16x16xf32> to vector<1x16x16xf32>
    tpu.vector_store %arg6[%c1_23, %c0_24, %c0_25], %50 {strides = array<i32>} : memref<2x16x16xf32, #tpu.memory_space<vmem>>, vector<1x16x16xf32>,
    %c0_i32_26 = arith.constant 0 : i32
    %51 = arith.cmpi eq, %arg2, %c0_i32_26 : i32
    %52 = arith.extui %51 : i1 to i32
    %c0_i32_27 = arith.constant 0 : i32
    %53 = arith.cmpi ne, %52, %c0_i32_27 : i32
    scf.if %53 {
      %c0_28 = arith.constant 0 : index
      %c0_29 = arith.constant 0 : index
      %c0_30 = arith.constant 0 : index
      %54 = vector.load %arg6[%c0_28, %c0_29, %c0_30] : memref<2x16x16xf32, #tpu.memory_space<vmem>>, vector<2x16x16xf32>
      %cst_31 = arith.constant dense<0.000000e+00> : vector<2x16xf32>
      %55 = vector.multi_reduction <add>, %54, %cst_31 [2] : vector<2x16x16xf32> to vector<2x16xf32>
      %cst_32 = arith.constant 1.791000e-03 : f32
      %56 = vector.broadcast %cst_32 : f32 to vector<2x16xf32>
      %57 = arith.mulf %56, %55 : vector<2x16xf32>
      %cst_33 = arith.constant 1.600000e+01 : f32
      %58 = vector.broadcast %cst_33 : f32 to vector<2x16xf32>
      %59 = arith.subf %58, %57 : vector<2x16xf32>
      %c0_34 = arith.constant 0 : index
      %c0_35 = arith.constant 0 : index
      %60 = vector.load %arg5[%c0_34, %c0_35] : memref<2x16xf32, #tpu.memory_space<vmem>>, vector<2x16xf32>
      tpu.vector_store %arg5[%c0_34, %c0_35], %59 {strides = array<i32>} : memref<2x16xf32, #tpu.memory_space<vmem>>, vector<2x16xf32>,
    } else {
    }
    return
  }
  func.func @transform_0(%arg0: i32, %arg1: i32, %arg2: i32) -> (i32, i32, i32) {
    %c0_i32 = arith.constant 0 : i32
    %c0_i32_0 = arith.constant 0 : i32
    return %c0_i32, %arg0, %arg2 : i32, i32, i32
  }
  func.func @transform_1(%arg0: i32, %arg1: i32, %arg2: i32) -> (i32, i32, i32) {
    %c0_i32 = arith.constant 0 : i32
    %c0_i32_0 = arith.constant 0 : i32
    return %c0_i32, %arg1, %arg2 : i32, i32, i32
  }
  func.func @transform_2(%arg0: i32, %arg1: i32, %arg2: i32) -> (i32, i32) {
    %c0_i32 = arith.constant 0 : i32
    return %arg0, %arg1 : i32, i32
  }
}

</mosaic_0001>

<bundles_post_ra>
// kernel: tpu_custom_call.1
= control target key start
LH: loop header
LB: loop body
LE: loop exit
PB: predicated region body
PF: predicated region fallthrough
CT: control target
= control target key end

     0   :  { %7 = vsyncpa [#allocation4], 0  ;;  %s366_s0 = inlined_call_operand.hbm [shape: f32[2,2,16], index: 0, kind: input, shape index: {}]   ;;  %s367_s1 = inlined_call_operand.hbm [shape: f32[2,16,16], index: 1, kind: input, shape index: {}]   ;;  %s368_s2 = inlined_call_operand.hbm [shape: f32[2,16], index: 2, kind: output, shape index: {}]  }
   0x1   :  { %8 = vsyncpa [#allocation7], 0 }
   0x2   :  { %9 = vsyncpa [#allocation5], 0  ;;  %s281_s9 = smov [#allocation3]   ;;  %s209_s13 = scalar_lea.hbm %s366_s0, 64 }
   0x3   :  { %s15_s10 = sshll.u32 %s281_s9, 4  ;;  %p210_p0 = scmp.ne.s32.totalorder %s366_s0, %s209_s13  ;;  %s16_s10 = int_to_ptr.vmem [resolvable:$true] %s15_s10 }
   0x4   :  { %p213_p1 = scmp.lt.u32.totalorder %s209_s13, %s366_s0 }
   0x6   :  { %p215_p2 = pnand %p213_p1, %p210_p0 }
   0x8   :  { %218 = shalt.err (!%p215_p2)
}
   0x9   :  { %s219_s18 = scalar_lea.vmem %s16_s10, 64  ;;  %p224_p4 = scmp.lt.s32.totalorder %s16_s10, %s16_s10 }
   0xa   :  { %p220_p3 = scmp.ne.s32.totalorder %s16_s10, %s219_s18  ;;  %p225_p5 = scmp.lt.s32.totalorder %s219_s18, %s219_s18 }
   0xc   :  { %p226_p6 = por %p225_p5, %p224_p4 }
   0xe   :  { %p227_p7 = pnand %p226_p6, %p220_p3 }
  0x10   :  { %230 = shalt.err (!%p227_p7)
}
  0x11   :  { %s282_s19 = smov 32   ;;  %s283_s20 = smov 2  }
  0x12   :  { %21 = dma.hbm_to_vmem [thread:$0]  %s366_s0, 64, %s16_s10, [#allocation4], %s282_s19, %s282_s19, %s283_s20  }
  0x13   :  { %s284_s23 = smov [#allocation6]   ;;  %s231_s27 = scalar_lea.hbm %s367_s1, 512 }
  0x14   :  { %s27_s24 = sshll.u32 %s284_s23, 4  ;;  %p232_p8 = scmp.ne.s32.totalorder %s367_s1, %s231_s27  ;;  %s28_s24 = int_to_ptr.vmem [resolvable:$true] %s27_s24 }
  0x15   :  { %p235_p9 = scmp.lt.u32.totalorder %s231_s27, %s367_s1 }
  0x17   :  { %p237_p10 = pnand %p235_p9, %p232_p8 }
  0x19   :  { %240 = shalt.err (!%p237_p10)
}
  0x1a   :  { %s241_s4 = scalar_lea.vmem %s28_s24, 512  ;;  %p246_p12 = scmp.lt.s32.totalorder %s28_s24, %s28_s24 }
  0x1b   :  { %p242_p11 = scmp.ne.s32.totalorder %s28_s24, %s241_s4  ;;  %p247_p13 = scmp.lt.s32.totalorder %s241_s4, %s241_s4 }
  0x1d   :  { %p248_p0 = por %p247_p13, %p246_p12 }
  0x1f   :  { %p249_p1 = pnand %p248_p0, %p242_p11 }
  0x21   :  { %252 = shalt.err (!%p249_p1)
}
  0x22   :  { %s285_s0 = smov 128   ;;  %s286_s5 = smov 8  }
  0x23   :  { %33 = dma.hbm_to_vmem [thread:$0]  %s367_s1, 512, %s28_s24, [#allocation7], %s285_s0, %s285_s0, %s286_s5  }
  0x24   :  { %275 = dma.done.wait [#allocation4], 64  }
  0x25   :  { %276 = vsyncadd [#allocation4], 4294967232 }
  0x26   :  { %277 = dma.done.wait [#allocation7], 512  }
  0x27   :  { %278 = vsyncadd [#allocation7], 4294966784  ;;  %vm44_vm0 = vcmask 130048   ;;  %v57_v0 = vlaneseq  ;;  %v287_v1 = vmov 0.0   ;;  %v49_v7 = vld [vmem:[#allocation6] sm:$0xff]  ;;  %v52_v9 = vld [vmem:[#allocation6 + $0x10] sm:$0xff] }
  0x28   :  { %47 = vst.msk [vmem:[#allocation2 + $0x10] sm:$0xff] %vm44_vm0, %v287_v1  ;;  %45 = vst.msk [vmem:[#allocation2] sm:$0xff] %vm44_vm0, %v287_v1  ;;  %v54_v8 = vld [vmem:[#allocation3] sm:$0x3]  ;;  %v56_v10 = vld [vmem:[#allocation3 + $0x2] sm:$0x3] }
  0x29   :  { %46 = vst.msk [vmem:[#allocation2 + $0x8] sm:$0xff] %vm44_vm0, %v287_v1  ;;  %48 = vst.msk [vmem:[#allocation2 + $0x18] sm:$0xff] %vm44_vm0, %v287_v1  ;;  %v332_v2 = vshrl.u32 %v57_v0, 7  ;;  %v334_v3 = vand.u32 127, %v57_v0  ;;  %v50_v15 = vld [vmem:[#allocation6 + $0x8] sm:$0xff]  ;;  %v53_v16 = vld [vmem:[#allocation6 + $0x18] sm:$0xff] }
  0x2a   :  { %vm161_vm1 = vcmask 130112   ;;  %s288_s1 = smov [#allocation8]   ;;  %vm172_vm2 = vcmask 1041409   ;;  %vm175_vm3 = vcmask 123904  }
  0x2b   :  { %v338_v4 = vsub.s32 %v334_v3, %v332_v2  ;;  %v90_v5 = vsub.s32 1, %v332_v2  ;;  %v59_v6 = vsub.s32 0, %v332_v2  ;;  %v156_v1 = vadd.s32 4294967288, %v334_v3  ;;  %s183_s8 = sshll.u32 %s288_s1, 4  ;;  %s184_s8 = int_to_ptr.vmem [resolvable:$true] %s183_s8 }
  0x2c   :  { %s253_s9 = scalar_lea.vmem %s184_s8, 32  ;;  %p258_p3 = scmp.lt.s32.totalorder %s184_s8, %s184_s8 }
  0x2d   :  { %v99_v11 = vrot.slane %v54_v8, %v90_v5  ;;  %v68_v12 = vrot.slane %v54_v8, %v59_v6  ;;  %v91_v13 = vrot.slane %v56_v10, %v90_v5  ;;  %v60_v14 = vrot.slane %v56_v10, %v59_v6  ;;  %p254_p2 = scmp.ne.s32.totalorder %s184_s8, %s253_s9  ;;  %p259_p4 = scmp.lt.s32.totalorder %s253_s9, %s253_s9 }
  0x2e   :  { %v159_v5 = vsub.s32 %v156_v1, %v332_v2 }
  0x2f   :  { %v100_v17 = vmul.f32 %v99_v11, %v49_v7  ;;  %v69_v18 = vmul.f32 %v68_v12, %v49_v7  ;;  %v101_v19 = vmul.f32 %v99_v11, %v50_v15  ;;  %v92_v20 = vmul.f32 %v91_v13, %v52_v9  ;;  %v113_v41 = vld [vmem:[#allocation2 + $0x10] sm:$0xff]  ;;  %v81_v45 = vld [vmem:[#allocation2] sm:$0xff]  ;;  %p260_p5 = por %p259_p4, %p258_p3 }
  0x30   :  { %v61_v21 = vmul.f32 %v60_v14, %v52_v9  ;;  %v93_v22 = vmul.f32 %v91_v13, %v53_v16  ;;  %v62_v23 = vmul.f32 %v60_v14, %v53_v16  ;;  %v70_v24 = vmul.f32 %v68_v12, %v50_v15  ;;  %v114_v48 = vld [vmem:[#allocation2 + $0x18] sm:$0xff]  ;;  %v82_v52 = vld [vmem:[#allocation2 + $0x8] sm:$0xff] }
  0x31   :  { %v94_v25 = vadd.f32 1.891891, %v92_v20  ;;  %p261_p6 = pnand %p260_p5, %p254_p2 }
  0x32   :  { %v63_v26 = vadd.f32 1.891891, %v61_v21  ;;  %v95_v27 = vadd.f32 1.891891, %v93_v22  ;;  %v64_v28 = vadd.f32 1.891891, %v62_v23 }
  0x33   :  { %v102_v29 = vsub.f32 %v94_v25, %v100_v17 }
  0x34   :  { %v71_v30 = vsub.f32 %v63_v26, %v69_v18  ;;  %v103_v31 = vsub.f32 %v95_v27, %v101_v19  ;;  %v72_v32 = vsub.f32 %v64_v28, %v70_v24 }
  0x35   :  { %201 = vrcp.f32 %v102_v29 }
  0x36   :  { %203 = vrcp.f32 %v71_v30 }
  0x37   :  { %205 = vrcp.f32 %v103_v31 }
  0x38   :  { %207 = vrcp.f32 %v72_v32 }
  0x3f   :  { %v202_v33 = vpop.eup %201 }
  0x40   :  { %v204_v34 = vpop.eup %203  ;;  %v106_v35 = vmul.f32 %v202_v33, %v102_v29 }
  0x41   :  { %v206_v36 = vpop.eup %205  ;;  %v75_v37 = vmul.f32 %v204_v34, %v71_v30 }
  0x42   :  { %v208_v38 = vpop.eup %207  ;;  %v108_v39 = vsub.f32 2.0, %v106_v35  ;;  %v107_v40 = vmul.f32 %v206_v36, %v103_v31 }
  0x43   :  { %v77_v42 = vsub.f32 2.0, %v75_v37  ;;  %v76_v43 = vmul.f32 %v208_v38, %v72_v32 }
  0x44   :  { %v110_v44 = vmul.f32 %v202_v33, %v108_v39  ;;  %v109_v46 = vsub.f32 2.0, %v107_v40 }
  0x45   :  { %v79_v47 = vmul.f32 %v204_v34, %v77_v42  ;;  %v78_v49 = vsub.f32 2.0, %v76_v43 }
  0x46   :  { %v115_v50 = vadd.f32 %v113_v41, %v110_v44  ;;  %v111_v51 = vmul.f32 %v206_v36, %v109_v46 }
  0x47   :  { %v83_v53 = vadd.f32 %v81_v45, %v79_v47  ;;  %v80_v54 = vmul.f32 %v208_v38, %v78_v49 }
  0x48   :  { %117 = vst.msk [vmem:[#allocation2 + $0x10] sm:$0xff] %vm44_vm0, %v115_v50  ;;  %v116_v55 = vadd.f32 %v114_v48, %v111_v51 }
  0x49   :  { %86 = vst.msk [vmem:[#allocation2] sm:$0xff] %vm44_vm0, %v83_v53  ;;  %v84_v56 = vadd.f32 %v82_v52, %v80_v54 }
  0x4a   :  { %118 = vst.msk [vmem:[#allocation2 + $0x18] sm:$0xff] %vm44_vm0, %v116_v55 }
  0x4b   :  { %87 = vst.msk [vmem:[#allocation2 + $0x8] sm:$0xff] %vm44_vm0, %v84_v56 }
  0x4f   :  { %v124_v57 = vld [vmem:[#allocation2 + $0x10] sm:$0xff] }
  0x50   :  { %v132_v58 = vsel %vm44_vm0, %v124_v57, 0.0  ;;  %v122_v59 = vld [vmem:[#allocation2] sm:$0xff] }
  0x51   :  { %133 = vadd.xlane.f32.xlu1 %v132_v58  ;;  %v126_v60 = vsel %vm44_vm0, %v122_v59, 0.0  ;;  %v125_v61 = vld [vmem:[#allocation2 + $0x18] sm:$0xff] }
  0x52   :  { %127 = vadd.xlane.f32.xlu0 %v126_v60  ;;  %v135_v62 = vsel %vm44_vm0, %v125_v61, 0.0  ;;  %v123_v63 = vld [vmem:[#allocation2 + $0x8] sm:$0xff] }
  0x53   :  { %v129_v0 = vsel %vm44_vm0, %v123_v63, 0.0 }
  0x55   :  { %136 = vadd.xlane.f32.xlu1 %v135_v62 }
  0x56   :  { %130 = vadd.xlane.f32.xlu0 %v129_v0 }
  0xde   :  { %v134_v6 = vpop.xlane.xlu1 %133 }
  0xdf   :  { %v140_v7 = vmul.f32 0.001791, %v134_v6  ;;  %v128_v8 = vpop.xlane.xlu0 %127 }
  0xe0   :  { %v138_v9 = vmul.f32 0.001791, %v128_v8 }
  0xe1   :  { %v144_v11 = vsub.f32 16.0, %v140_v7 }
  0xe2   :  { %v137_v10 = vpop.xlane.xlu1 %136  ;;  %v142_v14 = vsub.f32 16.0, %v138_v9 }
  0xe3   :  { %v141_v12 = vmul.f32 0.001791, %v137_v10  ;;  %v131_v13 = vpop.xlane.xlu0 %130  ;;  %v166_v18 = vrot.slane %v144_v11, %v338_v4 }
  0xe4   :  { %v139_v15 = vmul.f32 0.001791, %v131_v13  ;;  %v155_v2 = vrot.slane %v142_v14, %v338_v4 }
  0xe5   :  { %v145_v16 = vsub.f32 16.0, %v141_v12 }
  0xe6   :  { %v143_v17 = vsub.f32 16.0, %v139_v15 }
  0xe7   :  { %v170_v19 = vrot.slane %v145_v16, %v159_v5 }
  0xe8   :  { %v160_v3 = vrot.slane %v143_v17, %v159_v5 }
  0xe9   :  { %v171_v20 = vsel %vm161_vm1, %v170_v19, %v166_v18 }
  0xea   :  { %v162_v21 = vsel %vm161_vm1, %v160_v3, %v155_v2 }
  0xeb   :  { %v173_v22 = vsel %vm172_vm2, %v171_v20, %v162_v21 }
  0xec   :  { %176 = vst.msk [vmem:[#allocation8] sm:$0x3] %vm175_vm3, %v173_v22 }
  0xed   :  { %264 = shalt.err (!%p261_p6)
}
  0xee   :  { %s265_s12 = scalar_lea.hbm %s368_s2, 32 }
  0xef   :  { %p266_p7 = scmp.ne.s32.totalorder %s368_s2, %s265_s12  ;;  %p269_p8 = scmp.lt.u32.totalorder %s265_s12, %s368_s2 }
  0xf1   :  { %p271_p9 = pnand %p269_p8, %p266_p7 }
  0xf3   :  { %274 = shalt.err (!%p271_p9)
}
  0xf4   :  { %186 = dma.vmem_to_hbm [thread:$0]  %s184_s8, 32, %s368_s2, [#allocation5]  }
  0xf5   :  { %279 = dma.done.wait [#allocation5], 32  }
  0xf6   :  { %280 = vsyncadd [#allocation5], 4294967264 }
  0xf7   :  { %190 = vsyncpa [#allocation4], 1 }
  0xf8   :  { %191 = vsyncpa [#allocation7], 1 }
  0xf9   :  { %192 = vsyncpa [#allocation5], 1 }

</bundles_post_ra>
